<compile_context>
chip_gen: v7x
topology: tpu7x:2x2x1
jax: 0.10.0
libtpu: 0.0.40
codegen_flags: <defaults>
</compile_context>

<pallas_src>
import jax
import jax.numpy as jnp
from jax import lax
from jax.experimental import pallas as pl
from jax.experimental.pallas import tpu as pltpu


def _round_up(x, m):
    return ((x + m - 1) // m) * m


def _cdiv(a, b):
    return (a + b - 1) // b


def _vmem_capacity_bytes():
    try:
        info = pltpu.get_tpu_info()
        cap = int(getattr(info, "vmem_capacity_bytes", 0))
        if cap > 0:
            return cap
    except Exception:
        pass
    return 64 * 1024 * 1024  # conservative default (v7x-sized)


def _make_channel_avg_kernel(C, c_chunk, nb):
    """One (nb, C, T) input block -> (nb, 1, T) output block.

    Inner loop: pure elementwise VPU adds into a (c_chunk, T) f32 accumulator.
    Single cross-sublane (XLU) reduce per batch row after the loop.
    """
    n_full = C // c_chunk          # >= 1 because c_chunk <= C
    rem = C - n_full * c_chunk
    inv_c = 1.0 / float(C)
    unroll = n_full <= 16          # short fixed trip counts: full LLO visibility

    def kernel(x_ref, o_ref):
        for b in range(nb):        # nb is a small static block dim
            acc = x_ref[b, pl.ds(0, c_chunk), :].astype(jnp.float32)
            if n_full > 1:
                def body(i, acc):
                    start = pl.multiple_of(i * c_chunk, c_chunk)
                    xc = x_ref[b, pl.ds(start, c_chunk), :].astype(jnp.float32)
                    return acc + xc
                acc = lax.fori_loop(1, n_full, body, acc, unroll=unroll)
            total = jnp.sum(acc, axis=0, keepdims=True)
            if rem > 0:
                xr = x_ref[b, pl.ds(n_full * c_chunk, rem), :].astype(jnp.float32)
                total = total + jnp.sum(xr, axis=0, keepdims=True)
            o_ref[b, :, :] = (total * inv_c).astype(o_ref.dtype)

    return kernel


def channel_avg_pool(x):
    """Equivalent of torch.mean(x, dim=1).unsqueeze(1) for NCHW input."""
    N, C, H, W = x.shape
    HW = H * W
    itemsize = jnp.dtype(x.dtype).itemsize

    # --- lane axis: flatten spatial dims; pad only to a multiple of 128 -------
    HW_pad = _round_up(HW, 128)
    x_flat = x.reshape(N, C, HW)
    if HW_pad != HW:
        x_flat = jnp.pad(x_flat, ((0, 0), (0, 0), (0, HW_pad - HW)))

    # --- generation-aware VMEM budget -----------------------------------------
    cap = _vmem_capacity_bytes()
    if cap <= 64 * 1024 * 1024:           # v7x-class TC: 64 MiB VMEM, 2 TCs/chip
        ws_budget = 20 * 1024 * 1024
        vmem_limit = 36 * 1024 * 1024
        multi_core = True
    else:                                 # v5e / v6e: 128 MiB VMEM, 1 TC
        ws_budget = 44 * 1024 * 1024
        vmem_limit = 64 * 1024 * 1024
        multi_core = False

    # --- spatial tile: biggest lane-dense tile double-buffering fits ----------
    per_lane_bytes = 2 * (C + 1) * itemsize        # 2x: double-buffered in + out
    max_t = max(128, (ws_budget // per_lane_bytes) // 128 * 128)
    T = min(max_t, 32768, HW_pad)
    T = max(128, (T // 128) * 128)

    # v7x: make sure both TensorCores get several grid steps
    if multi_core:
        while N * _cdiv(HW_pad, T) < 8 and T > 128:
            T = max(128, (T // 2) // 128 * 128)

    spatial_steps = _cdiv(HW_pad, T)

    # --- batch several rows per block when spatial blocks are tiny ------------
    Nb = 1
    if spatial_steps == 1 and N > 1:
        block_bytes = 2 * (C + 1) * T * itemsize
        target = max(1, min(N, ws_budget // max(block_bytes, 1)))
        target = min(target, max(1, N // min(N, 8)))   # keep some grid steps
        Nb = max(d for d in range(1, target + 1) if N % d == 0)

    grid = (N // Nb, spatial_steps)

    # native sublane packing of the dtype: 8 f32, 16 bf16, 32 int8/fp8
    c_chunk = min(max(8, 32 // max(itemsize, 1)), C)

    cost = pl.CostEstimate(
        flops=N * C * HW,
        transcendentals=0,
        bytes_accessed=(N * C * HW_pad + N * HW_pad) * itemsize,
    )

    out = pl.pallas_call(
        _make_channel_avg_kernel(C, c_chunk, Nb),
        out_shape=jax.ShapeDtypeStruct((N, 1, HW_pad), x.dtype),
        grid_spec=pltpu.PrefetchScalarGridSpec(
            num_scalar_prefetch=0,
            grid=grid,
            in_specs=[pl.BlockSpec((Nb, C, T), lambda n, s: (n, 0, s))],
            out_specs=pl.BlockSpec((Nb, 1, T), lambda n, s: (n, 0, s)),
        ),
        compiler_params=pltpu.CompilerParams(
            dimension_semantics=("parallel", "parallel"),
            vmem_limit_bytes=vmem_limit,
        ),
        cost_estimate=cost,
    )(x_flat)

    if HW_pad != HW:
        out = out[:, :, :HW]
    return out.reshape(N, 1, H, W)


if __name__ == "__main__":
    key = jax.random.PRNGKey(0)
    # Small NCHW input consistent with the module's forward.
    x = jax.random.normal(key, (2, 4, 16, 16), dtype=jnp.float32)

    out = channel_avg_pool(x)
    out = jax.block_until_ready(out)

    # Reference check (mirrors torch.mean(x, dim=1).unsqueeze(1)).
    ref = jnp.mean(x, axis=1, keepdims=True)
    assert out.shape == (2, 1, 16, 16), out.shape
    assert jnp.allclose(out, ref, atol=1e-6, rtol=1e-6)

    print("KERNEL_OK")
</pallas_src>

<mosaic_0001>
module attributes {stable_mosaic.version = 11 : i64} {
  func.func @kernel(%arg0: i32, %arg1: i32, %arg2: memref<1x4x128xf32, #tpu.memory_space<vmem>>, %arg3: memref<1x1x128xf32, #tpu.memory_space<vmem>>) attributes {dimension_semantics = [#tpu.dimension_semantics<parallel>, #tpu.dimension_semantics<parallel>], iteration_bounds = array<i64: 2, 2>, scalar_prefetch = 0 : i64, scratch_operands = 0 : i64, tpu.core_type = #tpu.core_type<tc>, window_params = [{transform_indices = @transform_0, window_bounds = array<i64: 1, 4, 128>}, {transform_indices = @transform_1, window_bounds = array<i64: 1, 1, 128>}]} {
    %c0 = arith.constant 0 : index
    %c0_0 = arith.constant 0 : index
    %c0_1 = arith.constant 0 : index
    %0 = vector.load %arg2[%c0, %c0_0, %c0_1] : memref<1x4x128xf32, #tpu.memory_space<vmem>>, vector<1x4x128xf32>
    %1 = vector.shape_cast %0 : vector<1x4x128xf32> to vector<4x128xf32>
    %cst = arith.constant dense<0.000000e+00> : vector<128xf32>
    %2 = vector.multi_reduction <add>, %1, %cst [0] : vector<4x128xf32> to vector<128xf32>
    %3 = vector.shape_cast %2 : vector<128xf32> to vector<1x128xf32>
    %cst_2 = arith.constant 2.500000e-01 : f32
    %4 = vector.broadcast %cst_2 : f32 to vector<1x128xf32>
    %5 = arith.mulf %3, %4 : vector<1x128xf32>
    %c0_3 = arith.constant 0 : index
    %c0_4 = arith.constant 0 : index
    %c0_5 = arith.constant 0 : index
    %6 = vector.load %arg3[%c0_3, %c0_4, %c0_5] : memref<1x1x128xf32, #tpu.memory_space<vmem>>, vector<1x1x128xf32>
    %7 = vector.shape_cast %6 : vector<1x1x128xf32> to vector<1x128xf32>
    %8 = vector.shape_cast %5 : vector<1x128xf32> to vector<1x1x128xf32>
    tpu.vector_store %arg3[%c0_3, %c0_4, %c0_5], %8 {strides = array<i32>} : memref<1x1x128xf32, #tpu.memory_space<vmem>>, vector<1x1x128xf32>,
    return
  }
  func.func @transform_0(%arg0: i32, %arg1: i32) -> (i32, i32, i32) {
    %c0_i32 = arith.constant 0 : i32
    %c0_i32_0 = arith.constant 0 : i32
    return %arg0, %c0_i32, %arg1 : i32, i32, i32
  }
  func.func @transform_1(%arg0: i32, %arg1: i32) -> (i32, i32, i32) {
    %c0_i32 = arith.constant 0 : i32
    %c0_i32_0 = arith.constant 0 : i32
    return %arg0, %c0_i32, %arg1 : i32, i32, i32
  }
}

</mosaic_0001>

<bundles_post_ra>
// kernel: tpu_custom_call.1
= control target key start
LH: loop header
LB: loop body
LE: loop exit
PB: predicated region body
PF: predicated region fallthrough
CT: control target
= control target key end

     0   :  { %6 = vsyncpa [#allocation3], 0  ;;  %s684_s0 = inlined_call_operand.hbm [shape: f32[2,4,256], index: 0, kind: input, shape index: {}]   ;;  %s685_s1 = inlined_call_operand.hbm [shape: f32[2,1,256], index: 1, kind: output, shape index: {}]  }
   0x1   :  { %8 = vsyncpa [#allocation3 + $0x1], 0 }
   0x2   :  { %9 = vsyncpa [#allocation4], 0 }
   0x3   :  { %11 = vsyncpa [#allocation4 + $0x1], 0  ;;  %s489_s6 = smov 0   ;;  %s491_s7 = smov 0  }
   0x4   :  { %s493_s8 = smov 0   ;;  %s495_s9 = smov 0  }
   0x5   :  { %s497_s10 = smov 0   ;;  %s499_s11 = smov 0  }
   0x6   :  { %s501_s12 = smov 0   ;;  %s503_s13 = smov 0  }
   0x7 LB: > { %s256_s14 = sadd.s32 4294967295, %s475_s13   ;;  %s257_s15 = sadd.s32 4294967294, %s475_s13   ;;  %s475_s13 = sphi %s503_s13, %s17_s13   ;;  %s471_s12 = sphi %s501_s12, %s702_s12   ;;  %s467_s11 = sphi %s499_s11, %s701_s11   ;;  %s463_s10 = sphi %s497_s10, %s700_s10   ;;  %s459_s9 = sphi %s495_s9, %s699_s9   ;;  %s455_s8 = sphi %s493_s8, %s698_s8   ;;  %s451_s7 = sphi %s491_s7, %s697_s7   ;;  %s447_s6 = sphi %s489_s6, %s696_s6  }
   0x8   : > { %s26_s16 = sadd.s32 1, %s467_s11  ;;  %s29_s17 = sadd.s32 1, %s471_s12 }
   0x9   : > { %p27_p0 = scmp.ge.s32.totalorder %s26_s16, 2  ;;  %s38_s18 = sadd.s32 1, %s455_s8 }
   0xa   : > { %p45_p1 = scmp.ne.s32.totalorder %s455_s8, %s451_s7  ;;  %p46_p2 = scmp.eq.s32.totalorder %s475_s13, 0 }
   0xb   : > { %s704_s16 = smov (%p27_p0, %s26_s16), 0  ;;  %s706_s17 = smov (!%p27_p0, %s29_s17), %s471_s12 }
   0xc   : > { %s34_s19 = ssub.s32 %s467_s11, %s704_s16  ;;  %p542_p3 = por %p46_p2, %p45_p1 }
   0xd   : > { %p31_p4 = scmp.ge.s32.totalorder %s706_s17, 2  ;;  %p51_p5 = scmp.ne.s32.totalorder %s451_s7, %s447_s6 }
   0xe   : > { %p52_p6 = scmp.eq.s32.totalorder %s256_s14, 0  ;;  %p77_p7 = scmp.eq.s32.totalorder %s256_s14, 3 }
   0xf   : > { %s708_s17 = smov (%p31_p4, %s706_s17), 0  ;;  %p83_p10 = scmp.eq.s32.totalorder %s257_s15, 3 }
  0x10   : > { %p550_p8 = por %p52_p6, %p51_p5  ;;  %p554_p9 = por %p77_p7, %p45_p1 }
  0x11   : > { %s33_s23 = ssub.s32 %s471_s12, %s708_s17  ;;  %p560_p12 = por %p83_p10, %p51_p5 }
  0x12   : > { %s689_s22 = scalar_select %p554_p9, 1, 0 }
  0x13   : > { %s35_s24 = sor.u32 %s34_s19, %s33_s23  ;;  %p281_p13 = scmp.lt.s32.totalorder %s475_s13, 4 }
  0x14   : > { %p36_p11 = scmp.eq.s32.totalorder %s35_s24, 0  ;;  %s103_s26 = sand.u32 1, %s455_s8  }
  0x15   : > { %s690_s25 = scalar_select %p560_p12, 1, 0 }
  0x16   : > { %s567_s27 = scalar_select %p36_p11, %s455_s8, %s38_s18  }
  0x17   : > { %s260_s28 = sshll.u32 %s103_s26, 2  ;;  %s261_s29 = sshll.u32 %s471_s12, 1 }
  0x18   : > { %s112_s30 = sadd.s32 %s467_s11, %s261_s29  ;;  %s107_s2 = scalar_lea.vmem [#allocation2], %s260_s28 }
  0x19   : > { %s116_s3 = sshll.u32 %s107_s2, 4  ;;  %s262_s4 = sshll.u32 %s112_s30, 6  ;;  %s571_s3 = int_to_ptr.vmem [resolvable:$true] %s116_s3 }
  0x1a   : > { %s576_s15 = scalar_lea.hbm %s684_s0, %s262_s4  ;;  %p580_p0 = pnand %p281_p13, %p542_p3 }
  0x1b   : > { %s104_s19 = scalar_lea.sflag [#allocation3], %s103_s26  ;;  %s347_s23 = scalar_lea.hbm %s576_s15, 64 }
  0x1c   : > { %p348_p4 = scmp.ne.s32.totalorder %s576_s15, %s347_s23  ;;  %p349_p5 = pneg %p580_p0 }
  0x1d   : > { %s352_s28 = scalar_lea.hbm %s684_s0, 256  ;;  %p353_p3 = scmp.lt.u32.totalorder %s576_s15, %s684_s0 }
  0x1e   : > { %p350_p6 = pnand %p349_p5, %p348_p4  ;;  %p354_p10 = scmp.lt.u32.totalorder %s352_s28, %s347_s23 }
  0x1f   : > { %p356_p13 = scmp.lt.u32.totalorder %s347_s23, %s576_s15 }
  0x20   : > { %p351_p7 = pneg %p350_p6  ;;  %p355_p11 = por %p354_p10, %p353_p3 }
  0x22   : > { %p357_p1 = por %p356_p13, %p355_p11 }
  0x24   : > { %p358_p2 = pnand %p357_p1, %p351_p7 }
  0x26   : > { %361 = shalt.err (!%p358_p2)
}
  0x27   : > { %s362_s26 = scalar_lea.vmem %s571_s3, 64  ;;  %s477_s2 = smov [#allocation2]  }
  0x28   : > { %p363_p4 = scmp.ne.s32.totalorder %s571_s3, %s362_s26  ;;  %s367_s4 = sshll.u32 %s477_s2, 4  ;;  %s368_s4 = int_to_ptr.vmem [resolvable:$false] %s367_s4 }
  0x29   : > { %s369_s5 = scalar_lea.vmem %s368_s4, 128  ;;  %p370_p9 = scmp.lt.s32.totalorder %s571_s3, %s368_s4 }
  0x2a   : > { %p365_p6 = pnand %p363_p4, %p349_p5  ;;  %p371_p3 = scmp.lt.s32.totalorder %s369_s5, %s362_s26 }
  0x2c   : > { %p366_p12 = pneg %p365_p6  ;;  %p372_p10 = por %p371_p3, %p370_p9 }
  0x2e   : > { %p373_p11 = pnand %p372_p10, %p366_p12 }
  0x30   : > { %376 = shalt.err (!%p373_p11)
}
  0x31   : > { %276 = dma.hbm_to_vmem [thread:$0]  (!%p580_p0), %s576_s15, 64, %s571_s3, %s104_s19  }
  0x32   : > { %p692_p1 = scmp.lt.s32.totalorder %s475_s13, 5  ;;  %p693_p2 = scmp.ge.s32.totalorder %s475_s13, 1 }
  0x34   : > { %p122_p5 = pnand %p693_p2, %p692_p1 }
  0x35   : > { %s616_s14 = sand.u32 (!%p122_p5), 1, %s451_s7  }
  0x36   : > { %125 = sbr.rel (%p122_p5) target bundleno = 92 (0x5c), region = 24  ;;  %s264_s23 = sshll.u32 (!%p122_p5), %s616_s14, 2 }
  0x37   : > { %s128_s20 = scalar_lea.sflag (!%p122_p5), [#allocation3], %s616_s14  ;;  %s131_s24 = scalar_lea.vmem (!%p122_p5), [#allocation2], %s264_s23 }
  0x3d   : > { %438 = dma.done.wait (%p550_p8), %s128_s20, 64  }
  0x3e   : > { %440 = vsyncadd (%p550_p8), %s128_s20, 4294967232  ;;  %vm150_vm0 = vcmask 1043456   ;;  %v149_v0 = vld [vmem:[%s131_s24] sm:$0xf]  ;;  %s265_s3 = sshll.u32 %s463_s10, 1  ;;  %s148_s18 = scalar_lea.vmem [#allocation5], %s616_s14 }
  0x3f   : > { %v151_v1 = vsel %vm150_vm0, %v149_v0, 0.0  ;;  %s171_s15 = sadd.s32 %s459_s9, %s265_s3  ;;  %s175_s19 = sshll.u32 %s148_s18, 4  ;;  %s627_s19 = int_to_ptr.vmem [resolvable:$true] %s175_s19 }
  0x40   : > { %v152_v2 = vrot.slane %v151_v1, 4  ;;  %s266_s28 = sshll.u32 %s171_s15, 4  ;;  %s161_s10 = scalar_lea.sflag [#allocation4], %s616_s14 }
  0x41   : > { %s632_s30 = scalar_lea.hbm %s685_s1, %s266_s28  ;;  %s377_s26 = scalar_lea.vmem %s627_s19, 16 }
  0x42   : > { %v153_v3 = vadd.f32 %v152_v2, %v151_v1  ;;  %p378_p8 = scmp.ne.s32.totalorder %s627_s19, %s377_s26  ;;  %p694_p9 = scmp.ne.s32.totalorder %s689_s22, 0 }
  0x43   : > { %s478_s9 = smov [#allocation5]  }
  0x44   : > { %v154_v4 = vrot.slane %v153_v3, 2  ;;  %p379_p12 = pnand %p378_p8, %p694_p9  ;;  %s381_s2 = sshll.u32 %s478_s9, 4  ;;  %s382_s2 = int_to_ptr.vmem [resolvable:$false] %s381_s2 }
  0x45   : > { %s383_s4 = scalar_lea.vmem %s382_s2, 32  ;;  %p384_p7 = scmp.lt.s32.totalorder %s627_s19, %s382_s2 }
  0x46   : > { %v155_v5 = vadd.f32 %v154_v4, %v153_v3  ;;  %p380_p0 = pneg %p379_p12  ;;  %p385_p13 = scmp.lt.s32.totalorder %s383_s4, %s377_s26 }
  0x48   : > { %v156_v6 = vrot.slane %v155_v5, 1  ;;  %p386_p4 = por %p385_p13, %p384_p7 }
  0x4a   : > { %v157_v7 = vadd.f32 %v156_v6, %v155_v5  ;;  %p387_p6 = pnand %p386_p4, %p380_p0 }
  0x4c   : > { %v158_v8 = vmul.f32 0.25, %v157_v7 }
  0x4e   : > { %159 = vst [vmem:[%s148_s18] sm:$0x1] %v158_v8 }
  0x4f   : > { %390 = shalt.err (!%p387_p6)
}
  0x50   : > { %s391_s5 = scalar_lea.hbm %s632_s30, 16  ;;  %s395_s20 = scalar_lea.hbm %s685_s1, 64 }
  0x51   : > { %p392_p3 = scmp.ne.s32.totalorder %s632_s30, %s391_s5  ;;  %p396_p1 = scmp.lt.u32.totalorder %s632_s30, %s685_s1 }
  0x52   : > { %p397_p2 = scmp.lt.u32.totalorder %s395_s20, %s391_s5  ;;  %p399_p8 = scmp.lt.u32.totalorder %s391_s5, %s632_s30 }
  0x53   : > { %p393_p10 = pnand %p392_p3, %p694_p9 }
  0x54   : > { %p398_p5 = por %p397_p2, %p396_p1 }
  0x55   : > { %p394_p11 = pneg %p393_p10 }
  0x56   : > { %p400_p12 = por %p399_p8, %p398_p5 }
  0x58   : > { %p401_p0 = pnand %p400_p12, %p394_p11 }
  0x5a   : > { %404 = shalt.err (!%p401_p0)
}
  0x5b   : > { %271 = dma.vmem_to_hbm [thread:$0]  (%p694_p9), %s627_s19, 16, %s632_s30, %s161_s10  }
  0x5c PF: > { %p282_p7 = scmp.ge.s32.totalorder %s475_s13, 2  ;;  %s187_s15 = sand.u32 1, %s447_s6  }
  0x5d   : > { %p695_p13 = scmp.ne.s32.totalorder %s690_s25, 0  ;;  %s188_s18 = scalar_lea.sflag [#allocation4], %s187_s15 }
  0x5f   : > { %p278_p4 = pnand %p282_p7, %p695_p13 }
  0x61   : > { %442 = dma.done.wait (!%p278_p4), %s188_s18, 16  }
  0x62   : > { %444 = vsyncadd (!%p278_p4), %s188_s18, 4294967280  ;;  %s17_s13 = sadd.s32 1, %s475_s13   ;;  %s696_s6 = smov %s451_s7 }
  0x63   : > { %p14_p6 = scmp.ge.s32.totalorder %s17_s13, 6   ;;  %s697_s7 = smov %s455_s8 }
  0x64   : > { %s698_s8 = smov %s567_s27  ;;  %s699_s9 = smov %s467_s11 }
  0x65   : > { %s700_s10 = smov %s471_s12  ;;  %s701_s11 = smov %s704_s16 }
  0x66   : > { %s702_s12 = smov %s708_s17  ;;  %16 = sbr.rel (!%p14_p6) target bundleno = 7 (0x7), region = 69 }
  0x6d   :  { %192 = vsyncpa [#allocation3], 1 }
  0x6e   :  { %194 = vsyncpa [#allocation3 + $0x1], 1 }
  0x6f   :  { %195 = vsyncpa [#allocation4], 1 }
  0x70   :  { %197 = vsyncpa [#allocation4 + $0x1], 1 }

</bundles_post_ra>
